<compile_context>
chip_gen: v6e
topology: v6e:2x2x1
jax: 0.10.0
libtpu: 0.0.40
codegen_flags: <defaults>
</compile_context>

<pallas_src>
import math

import jax
import jax.numpy as jnp
from jax.experimental import pallas as pl
from jax.experimental.pallas import tpu as pltpu


# ~2 MiB per block: with in+out double buffering this is ~8 MiB of VMEM,
# which fits v5e (16 MiB default scoped), v6e (32 MiB) and v7x (32 MiB).
_TARGET_BLOCK_BYTES = 2 * 1024 * 1024
_LANE_CANDIDATES = (512, 256, 128)


def _flatten_copy_kernel(x_ref, o_ref):
    # Identity copy of the current (row_tile, lane) block into the flattened
    # output slab. This is the whole hot path of FlattenLayer.
    o_ref[...] = x_ref[...]


def _sublane_multiple(dtype) -> int:
    # Native sublane packing: 8 rows for 32-bit, 16 for 16-bit, 32 for 8-bit.
    itemsize = jnp.dtype(dtype).itemsize
    return max(8, 32 // itemsize)


def flatten_layer(x: jax.Array) -> jax.Array:
    """Pallas equivalent of FlattenLayer.forward: (N, ...) -> (N, prod(...))."""
    n = x.shape[0]
    feat = math.prod(x.shape[1:]) if len(x.shape) > 1 else 1
    total = n * feat
    dtype = x.dtype
    itemsize = jnp.dtype(dtype).itemsize
    sub = _sublane_multiple(dtype)

    # Pick the widest lane tile that divides the flat length without padding;
    # otherwise pad up to a (lane * sub)-element boundary and slice afterwards.
    lane = None
    for cand in _LANE_CANDIDATES:
        if total % (cand * sub) == 0:
            lane = cand
            break
    if lane is None:
        lane = _LANE_CANDIDATES[0]
    chunk = lane * sub
    padded_total = ((total + chunk - 1) // chunk) * chunk

    # Row-major collapse (metadata-only for a contiguous input).
    x_flat = jnp.reshape(x, (total,))
    if padded_total != total:
        x_flat = jnp.pad(x_flat, (0, padded_total - total))

    rows = padded_total // lane
    x2d = jnp.reshape(x_flat, (rows, lane))

    # Row tile: multiple of the sublane packing, block size capped at ~2 MiB.
    max_rows = max(sub, (_TARGET_BLOCK_BYTES // (lane * itemsize)) // sub * sub)
    row_tile = min(rows, max_rows)
    grid = (pl.cdiv(rows, row_tile),)

    out2d = pl.pallas_call(
        _flatten_copy_kernel,
        out_shape=jax.ShapeDtypeStruct((rows, lane), dtype),
        grid_spec=pltpu.PrefetchScalarGridSpec(
            num_scalar_prefetch=0,
            grid=grid,
            in_specs=[pl.BlockSpec((row_tile, lane), lambda i: (i, 0))],
            out_specs=pl.BlockSpec((row_tile, lane), lambda i: (i, 0)),
        ),
        compiler_params=pltpu.CompilerParams(
            dimension_semantics=("parallel",),
        ),
    )(x2d)

    out_flat = jnp.reshape(out2d, (padded_total,))
    if padded_total != total:
        out_flat = out_flat[:total]
    return jnp.reshape(out_flat, (n, feat))


if __name__ == "__main__":
    key = jax.random.PRNGKey(0)

    # Small NCHW input consistent with what FlattenLayer typically receives.
    x = jax.random.normal(key, (2, 4, 16, 16), dtype=jnp.float32)
    out = flatten_layer(x)
    jax.block_until_ready(out)

    ref = jnp.reshape(x, (x.shape[0], -1))
    assert out.shape == (2, 4 * 16 * 16), out.shape
    assert out.dtype == x.dtype
    assert bool(jnp.array_equal(out, ref))

    # Exercise the unaligned (pad + slice) path as well.
    key2 = jax.random.PRNGKey(0)
    x2 = jax.random.normal(key2, (2, 3, 5, 7), dtype=jnp.float32)
    out2 = flatten_layer(x2)
    jax.block_until_ready(out2)
    ref2 = jnp.reshape(x2, (x2.shape[0], -1))
    assert out2.shape == (2, 3 * 5 * 7), out2.shape
    assert bool(jnp.array_equal(out2, ref2))

    print("KERNEL_OK")
</pallas_src>

<mosaic_0001>
module attributes {stable_mosaic.version = 11 : i64} {
  func.func @_flatten_copy_kernel(%arg0: i32, %arg1: memref<8x256xf32, #tpu.memory_space<vmem>>, %arg2: memref<8x256xf32, #tpu.memory_space<vmem>>) attributes {dimension_semantics = [#tpu.dimension_semantics<parallel>], iteration_bounds = array<i64: 1>, scalar_prefetch = 0 : i64, scratch_operands = 0 : i64, tpu.core_type = #tpu.core_type<tc>, window_params = [{transform_indices = @transform_0, window_bounds = array<i64: 8, 256>}, {transform_indices = @transform_1, window_bounds = array<i64: 8, 256>}]} {
    %c0 = arith.constant 0 : index
    %c0_0 = arith.constant 0 : index
    %0 = vector.load %arg1[%c0, %c0_0] : memref<8x256xf32, #tpu.memory_space<vmem>>, vector<8x256xf32>
    %c0_1 = arith.constant 0 : index
    %c0_2 = arith.constant 0 : index
    %1 = vector.load %arg2[%c0_1, %c0_2] : memref<8x256xf32, #tpu.memory_space<vmem>>, vector<8x256xf32>
    tpu.vector_store %arg2[%c0_1, %c0_2], %0 {strides = array<i32>} : memref<8x256xf32, #tpu.memory_space<vmem>>, vector<8x256xf32>,
    return
  }
  func.func @transform_0(%arg0: i32) -> (i32, i32) {
    %c0_i32 = arith.constant 0 : i32
    %c0_i32_0 = arith.constant 0 : i32
    return %arg0, %c0_i32 : i32, i32
  }
  func.func @transform_1(%arg0: i32) -> (i32, i32) {
    %c0_i32 = arith.constant 0 : i32
    %c0_i32_0 = arith.constant 0 : i32
    return %arg0, %c0_i32 : i32, i32
  }
}

</mosaic_0001>

<bundles_post_ra>
// kernel: tpu_custom_call.1
= control target key start
LH: loop header
LB: loop body
LE: loop exit
PB: predicated region body
PF: predicated region fallthrough
CT: control target
= control target key end

     0   :  { %6 = vsyncpa [#allocation3], 0  ;;  %s104_s0 = inlined_call_operand.hbm [shape: f32[8,256], index: 0, kind: input, shape index: {}]   ;;  %s105_s1 = inlined_call_operand.hbm [shape: f32[8,256], index: 1, kind: output, shape index: {}]  }
   0x1   :  { %7 = vsyncpa [#allocation4], 0  ;;  %s86_s6 = smov [#allocation2]  }
   0x2   :  { %s14_s7 = sshll.u32 %s86_s6, 4  ;;  %s15_s7 = int_to_ptr.vmem [resolvable:$true] %s14_s7 }
   0x3   :  { %s50_s8 = scalar_lea.vmem %s15_s7, 256  ;;  %p55_p1 = scmp.lt.s32.totalorder %s15_s7, %s15_s7 }
   0x4   :  { %p51_p0 = scmp.ne.s32.totalorder %s15_s7, %s50_s8  ;;  %p56_p2 = scmp.lt.s32.totalorder %s50_s8, %s50_s8 }
   0x6   :  { %p57_p3 = por %p56_p2, %p55_p1 }
   0x8   :  { %p58_p4 = pnand %p57_p3, %p51_p0 }
   0xa   :  { %61 = shalt.err (!%p58_p4)
}
   0xb   :  { %17 = dma.hbm_to_vmem [thread:$0]  %s104_s0, 256, %s15_s7, [#allocation3]  }
   0xc   :  { %82 = dma.done.wait [#allocation3], 256  }
   0xd   :  { %83 = vsyncadd [#allocation3], 4294967040  ;;  %s87_s11 = smov [#allocation5]   ;;  %v21_v0 = vld [vmem:[#allocation2] sm:$0xff]  ;;  %v22_v1 = vld [vmem:[#allocation2 + $0x8] sm:$0xff] }
   0xe   :  { %s31_s12 = sshll.u32 %s87_s11, 4  ;;  %23 = vst [vmem:[#allocation5] sm:$0xff] %v21_v0  ;;  %24 = vst [vmem:[#allocation5 + $0x8] sm:$0xff] %v22_v1  ;;  %s32_s12 = int_to_ptr.vmem [resolvable:$true] %s31_s12 }
   0xf   :  { %s62_s13 = scalar_lea.vmem %s32_s12, 256  ;;  %p67_p6 = scmp.lt.s32.totalorder %s32_s12, %s32_s12 }
  0x10   :  { %p63_p5 = scmp.ne.s32.totalorder %s32_s12, %s62_s13  ;;  %p68_p7 = scmp.lt.s32.totalorder %s62_s13, %s62_s13 }
  0x12   :  { %p69_p8 = por %p68_p7, %p67_p6 }
  0x14   :  { %p70_p9 = pnand %p69_p8, %p63_p5 }
  0x16   :  { %73 = shalt.err (!%p70_p9)
}
  0x17   :  { %34 = dma.vmem_to_hbm [thread:$0]  %s32_s12, 256, %s105_s1, [#allocation4]  }
  0x18   :  { %84 = dma.done.wait [#allocation4], 256  }
  0x19   :  { %85 = vsyncadd [#allocation4], 4294967040 }
  0x1a   :  { %38 = vsyncpa [#allocation3], 1 }
  0x1b   :  { %39 = vsyncpa [#allocation4], 1 }

</bundles_post_ra>
